<compile_context>
chip_gen: v5e
topology: v5e:2x2
jax: 0.10.0
libtpu: 0.0.40
codegen_flags: <defaults>
</compile_context>

<pallas_src>
import functools

import jax
import jax.numpy as jnp
from jax.experimental import pallas as pl
from jax.experimental.pallas import tpu as pltpu


def _right_branch_kernel(xr_ref, w1_ref, b1_ref, w2_ref, w3_ref, b3_ref,
                         mask_ref, o_ref, scr_ref, *, img_w, lane_pad):
    # xr_ref:   (Cin,  P)  right-branch input, P = padded N*H*W (lane axis)
    # w1_ref:   (Cr, Cin)  conv1 1x1 weights with bn1 scale folded in
    # b1_ref:   (Cr, 1)    folded bn1 bias
    # w2_ref:   (Cr, 9)    raw depthwise 3x3 taps, row-major (ky, kx)
    # w3_ref:   (Cr, Cr)   conv3 1x1 weights with bn2 & bn3 scales folded in
    # b3_ref:   (Cr, 1)    folded bn2/bn3 bias
    # mask_ref: (9, P)     1.0 where the (ky, kx) neighbour is inside the image
    # scr_ref:  (Cr, P + 2*lane_pad) VMEM scratch for the shifted-window taps
    P = xr_ref.shape[1]

    def pointwise_relu(x, w, b):
        # 1x1 conv (+ folded BN + ReLU).  The right-branch channel counts here
        # are tiny, so an unrolled VPU MAC beats waking the MXU; for real
        # ShuffleNet widths (>=24) this would be jnp.dot on the MXU.
        cout, cin = w.shape
        acc = jnp.zeros((cout, P), jnp.float32)
        for ci in range(cin):
            acc = acc + w[:, ci:ci + 1] * x[ci:ci + 1, :]
        return jnp.maximum(acc + b, 0.0)

    # ---- pass 1: conv1 (1x1) + bn1 + relu  (bn1 folded into w1/b1) ----------
    t = pointwise_relu(xr_ref[...], w1_ref[...], b1_ref[...])

    # ---- pass 2: conv2 (3x3 depthwise, pad=1); bn2 folded downstream --------
    # Zero only the two small edge strips (once); the payload store below is
    # sublane-aligned and lane-dense.
    cr = t.shape[0]
    scr_ref[:, pl.ds(0, lane_pad)] = jnp.zeros((cr, lane_pad), jnp.float32)
    scr_ref[:, pl.ds(lane_pad + P, lane_pad)] = jnp.zeros((cr, lane_pad),
                                                          jnp.float32)
    scr_ref[:, pl.ds(lane_pad, P)] = t

    w2 = w2_ref[...]          # (Cr, 9) per-channel taps
    masks = mask_ref[...]     # (9, P)  border-validity masks
    acc = jnp.zeros_like(t)
    tap = 0
    for ky in (-1, 0, 1):
        for kx in (-1, 0, 1):
            d = ky * img_w + kx
            win = scr_ref[:, pl.ds(lane_pad + d, P)]   # t shifted by (ky, kx)
            if ky == 0 and kx == 0:
                acc = acc + win * w2[:, tap:tap + 1]   # centre tap needs no mask
            else:
                acc = acc + (win * masks[tap:tap + 1, :]) * w2[:, tap:tap + 1]
            tap += 1

    # ---- pass 3: conv3 (1x1) + (bn2,bn3 folded) + relu -----------------------
    o_ref[...] = pointwise_relu(acc, w3_ref[...], b3_ref[...]).astype(o_ref.dtype)


def shufv2_unit_stride1(x_nchw, conv1_w, bn1, conv2_w, bn2, conv3_w, bn3,
                        c_tag=0.5, groups=2, eps=1e-5):
    """Shufv2Unit.forward, stride=1 branch, eval-mode BatchNorm.

    x_nchw:  (N, C, H, W) f32
    conv1_w: (Cr, Cr_in, 1, 1), conv2_w: (Cr, 1, 3, 3), conv3_w: (Cr, Cr, 1, 1)
    bn1/bn2/bn3: tuples (gamma, beta, running_mean, running_var), each (Cr,)
    """
    N, C, H, W = x_nchw.shape
    left_part = int(round(c_tag * C))
    x = x_nchw.astype(jnp.float32)
    left = x[:, :left_part]                             # untouched, bypasses kernel
    right = x[:, left_part:]                            # (N, Cr_in, H, W)
    cr_in = C - left_part
    cr_out = conv1_w.shape[0]

    # ---- fold eval-mode BN into the pointwise convs --------------------------
    def bn_fold(g, b, m, v):
        s = g / jnp.sqrt(v + eps)
        return s, b - m * s

    s1, c1 = bn_fold(*bn1)
    s2, c2 = bn_fold(*bn2)
    s3, c3 = bn_fold(*bn3)

    W1 = conv1_w[:, :, 0, 0].astype(jnp.float32)        # (Cr, Cr_in)
    W3 = conv3_w[:, :, 0, 0].astype(jnp.float32)        # (Cr, Cr)
    w1f = (s1[:, None] * W1).astype(jnp.float32)        # bn1 scale folded
    b1f = c1[:, None].astype(jnp.float32)               # (Cr, 1)
    w2f = conv2_w[:, 0].reshape(cr_out, 9).astype(jnp.float32)   # raw dw taps
    w3f = ((s3[:, None] * W3) * s2[None, :]).astype(jnp.float32) # bn2+bn3 folded
    b3f = (s3 * (W3 @ c2) + c3)[:, None].astype(jnp.float32)     # (Cr, 1)

    # ---- lane-dense activation layout: channels x (N*H*W) --------------------
    P = N * H * W
    P_pad = ((P + 127) // 128) * 128                    # keep the lane axis dense
    xr = right.transpose(1, 0, 2, 3).reshape(cr_in, P)
    if P_pad != P:
        xr = jnp.pad(xr, ((0, 0), (0, P_pad - P)))

    # Border-validity masks for the 9 depthwise taps (iota-derived, built once).
    pos = jnp.arange(P_pad)
    hh = (pos // W) % H
    ww = pos % W
    rows = []
    for ky in (-1, 0, 1):
        for kx in (-1, 0, 1):
            ok = (hh + ky >= 0) & (hh + ky < H) & (ww + kx >= 0) & (ww + kx < W)
            rows.append(ok)
    masks = jnp.stack(rows, 0).astype(jnp.float32)      # (9, P_pad)

    lane_pad = W + 1                                    # max |shift| of any tap
    kernel = functools.partial(_right_branch_kernel, img_w=W, lane_pad=lane_pad)

    right_out = pl.pallas_call(
        kernel,
        out_shape=jax.ShapeDtypeStruct((cr_out, P_pad), jnp.float32),
        grid_spec=pltpu.PrefetchScalarGridSpec(
            num_scalar_prefetch=0,
            grid=(1,),                                  # whole batch, one invocation
            in_specs=[
                pl.BlockSpec((cr_in, P_pad), lambda i: (0, 0)),
                pl.BlockSpec((cr_out, cr_in), lambda i: (0, 0)),
                pl.BlockSpec((cr_out, 1), lambda i: (0, 0)),
                pl.BlockSpec((cr_out, 9), lambda i: (0, 0)),
                pl.BlockSpec((cr_out, cr_out), lambda i: (0, 0)),
                pl.BlockSpec((cr_out, 1), lambda i: (0, 0)),
                pl.BlockSpec((9, P_pad), lambda i: (0, 0)),
            ],
            out_specs=pl.BlockSpec((cr_out, P_pad), lambda i: (0, 0)),
            scratch_shapes=[
                pltpu.VMEM((cr_out, P_pad + 2 * lane_pad), jnp.float32)],
        ),
    )(xr, w1f, b1f, w2f, w3f, b3f, masks)

    right_out = right_out[:, :P].reshape(cr_out, N, H, W).transpose(1, 0, 2, 3)

    # concat + channel shuffle (groups=2): pure layout, left by XLA in the
    # wrapper.  Standard ChannelShuffle convention:
    #   view(N, g, C//g, H, W) -> transpose(1, 2) -> view(N, C, H, W)
    cat = jnp.concatenate([left, right_out], axis=1)    # (N, C, H, W)
    Cout = cat.shape[1]
    out = (cat.reshape(N, groups, Cout // groups, H, W)
              .transpose(0, 2, 1, 3, 4)
              .reshape(N, Cout, H, W))
    return out


def _ref_forward(x, conv1_w, bn1, conv2_w, bn2, conv3_w, bn3,
                 c_tag=0.5, groups=2, eps=1e-5):
    """Pure-JAX reference of the PyTorch forward (stride=1, eval-mode BN)."""
    N, C, H, W = x.shape
    left_part = int(round(c_tag * C))
    left, right = x[:, :left_part], x[:, left_part:]

    def bn(y, p):
        g, b, m, v = p
        return ((y - m[None, :, None, None])
                / jnp.sqrt(v[None, :, None, None] + eps)
                * g[None, :, None, None] + b[None, :, None, None])

    dn = ('NCHW', 'OIHW', 'NCHW')
    out = jax.lax.conv_general_dilated(right, conv1_w, (1, 1), 'VALID',
                                       dimension_numbers=dn)
    out = jnp.maximum(bn(out, bn1), 0.0)
    out = jax.lax.conv_general_dilated(out, conv2_w, (1, 1), ((1, 1), (1, 1)),
                                       dimension_numbers=dn,
                                       feature_group_count=out.shape[1])
    out = bn(out, bn2)
    out = jax.lax.conv_general_dilated(out, conv3_w, (1, 1), 'VALID',
                                       dimension_numbers=dn)
    out = jnp.maximum(bn(out, bn3), 0.0)

    cat = jnp.concatenate([left, out], axis=1)
    Cout = cat.shape[1]
    return (cat.reshape(N, groups, Cout // groups, H, W)
               .transpose(0, 2, 1, 3, 4).reshape(N, Cout, H, W))


if __name__ == "__main__":
    key = jax.random.PRNGKey(0)
    N, C, H, W = 2, 4, 16, 16          # _in = _out = 4, stride = 1 (default)
    c_tag, groups = 0.5, 2
    left_part = int(round(c_tag * C))
    cr_in = C - left_part
    cr_out = C - left_part

    keys = jax.random.split(key, 8)
    x = jax.random.normal(keys[0], (N, C, H, W), dtype=jnp.float32)
    conv1_w = 0.4 * jax.random.normal(keys[1], (cr_out, cr_in, 1, 1), jnp.float32)
    conv2_w = 0.3 * jax.random.normal(keys[2], (cr_out, 1, 3, 3), jnp.float32)
    conv3_w = 0.4 * jax.random.normal(keys[3], (cr_out, cr_out, 1, 1), jnp.float32)

    def bn_params(k):
        k1, k2, k3, k4 = jax.random.split(k, 4)
        return (1.0 + 0.1 * jax.random.normal(k1, (cr_out,), jnp.float32),
                0.1 * jax.random.normal(k2, (cr_out,), jnp.float32),
                0.1 * jax.random.normal(k3, (cr_out,), jnp.float32),
                jnp.abs(jax.random.normal(k4, (cr_out,), jnp.float32)) + 0.5)

    bn1 = bn_params(keys[4])
    bn2 = bn_params(keys[5])
    bn3 = bn_params(keys[6])

    out = shufv2_unit_stride1(x, conv1_w, bn1, conv2_w, bn2, conv3_w, bn3,
                              c_tag=c_tag, groups=groups)
    out = jax.block_until_ready(out)

    ref = _ref_forward(x, conv1_w, bn1, conv2_w, bn2, conv3_w, bn3,
                       c_tag=c_tag, groups=groups)
    assert out.shape == (N, C, H, W), out.shape
    max_err = float(jnp.max(jnp.abs(out - ref)))
    assert jnp.allclose(out, ref, rtol=1e-4, atol=1e-4), max_err

    print("KERNEL_OK")
</pallas_src>

<mosaic_0001>
module attributes {stable_mosaic.version = 11 : i64} {
  func.func @_right_branch_kernel(%arg0: i32, %arg1: memref<2x512xf32, #tpu.memory_space<vmem>>, %arg2: memref<2x2xf32, #tpu.memory_space<vmem>>, %arg3: memref<2x1xf32, #tpu.memory_space<vmem>>, %arg4: memref<2x9xf32, #tpu.memory_space<vmem>>, %arg5: memref<2x2xf32, #tpu.memory_space<vmem>>, %arg6: memref<2x1xf32, #tpu.memory_space<vmem>>, %arg7: memref<9x512xf32, #tpu.memory_space<vmem>>, %arg8: memref<2x512xf32, #tpu.memory_space<vmem>>, %arg9: memref<2x546xf32, #tpu.memory_space<vmem>>) attributes {dimension_semantics = [#tpu.dimension_semantics<arbitrary>], iteration_bounds = array<i64: 1>, scalar_prefetch = 0 : i64, scratch_operands = 1 : i64, tpu.core_type = #tpu.core_type<tc>, window_params = [{pipeline_mode = #tpu.pipeline_mode<synchronous>, transform_indices = @transform_0, window_bounds = array<i64: 2, 512>}, {pipeline_mode = #tpu.pipeline_mode<synchronous>, transform_indices = @transform_1, window_bounds = array<i64: 2, 2>}, {pipeline_mode = #tpu.pipeline_mode<synchronous>, transform_indices = @transform_2, window_bounds = array<i64: 2, 1>}, {pipeline_mode = #tpu.pipeline_mode<synchronous>, transform_indices = @transform_3, window_bounds = array<i64: 2, 9>}, {pipeline_mode = #tpu.pipeline_mode<synchronous>, transform_indices = @transform_4, window_bounds = array<i64: 2, 2>}, {pipeline_mode = #tpu.pipeline_mode<synchronous>, transform_indices = @transform_5, window_bounds = array<i64: 2, 1>}, {pipeline_mode = #tpu.pipeline_mode<synchronous>, transform_indices = @transform_6, window_bounds = array<i64: 9, 512>}, {pipeline_mode = #tpu.pipeline_mode<synchronous>, transform_indices = @transform_7, window_bounds = array<i64: 2, 512>}]} {
    %c0 = arith.constant 0 : index
    %c0_0 = arith.constant 0 : index
    %0 = vector.load %arg1[%c0, %c0_0] : memref<2x512xf32, #tpu.memory_space<vmem>>, vector<2x512xf32>
    %c0_1 = arith.constant 0 : index
    %c0_2 = arith.constant 0 : index
    %1 = vector.load %arg2[%c0_1, %c0_2] : memref<2x2xf32, #tpu.memory_space<vmem>>, vector<2x2xf32>
    %c0_3 = arith.constant 0 : index
    %c0_4 = arith.constant 0 : index
    %2 = vector.load %arg3[%c0_3, %c0_4] : memref<2x1xf32, #tpu.memory_space<vmem>>, vector<2x1xf32>
    %cst = arith.constant 0.000000e+00 : f32
    %3 = vector.broadcast %cst : f32 to vector<2x512xf32>
    %4 = vector.extract_strided_slice %1 {offsets = [0, 0], sizes = [2, 1], strides = [1, 1]} : vector<2x2xf32> to vector<2x1xf32>
    %5 = vector.extract_strided_slice %0 {offsets = [0, 0], sizes = [1, 512], strides = [1, 1]} : vector<2x512xf32> to vector<1x512xf32>
    %6 = vector.broadcast %4 : vector<2x1xf32> to vector<2x512xf32>
    %7 = vector.broadcast %5 : vector<1x512xf32> to vector<2x512xf32>
    %8 = arith.mulf %6, %7 : vector<2x512xf32>
    %9 = arith.addf %3, %8 : vector<2x512xf32>
    %10 = vector.extract_strided_slice %1 {offsets = [0, 1], sizes = [2, 1], strides = [1, 1]} : vector<2x2xf32> to vector<2x1xf32>
    %11 = vector.extract_strided_slice %0 {offsets = [1, 0], sizes = [1, 512], strides = [1, 1]} : vector<2x512xf32> to vector<1x512xf32>
    %12 = vector.broadcast %10 : vector<2x1xf32> to vector<2x512xf32>
    %13 = vector.broadcast %11 : vector<1x512xf32> to vector<2x512xf32>
    %14 = arith.mulf %12, %13 : vector<2x512xf32>
    %15 = arith.addf %9, %14 : vector<2x512xf32>
    %16 = vector.broadcast %2 : vector<2x1xf32> to vector<2x512xf32>
    %17 = arith.addf %15, %16 : vector<2x512xf32>
    %cst_5 = arith.constant 0.000000e+00 : f32
    %18 = vector.broadcast %cst_5 : f32 to vector<2x512xf32>
    %19 = arith.maximumf %17, %18 : vector<2x512xf32>
    %cst_6 = arith.constant 0.000000e+00 : f32
    %20 = vector.broadcast %cst_6 : f32 to vector<2x17xf32>
    %c0_7 = arith.constant 0 : index
    %c0_8 = arith.constant 0 : index
    %21 = vector.load %arg9[%c0_7, %c0_8] : memref<2x546xf32, #tpu.memory_space<vmem>>, vector<2x17xf32>
    tpu.vector_store %arg9[%c0_7, %c0_8], %20 {strides = array<i32>} : memref<2x546xf32, #tpu.memory_space<vmem>>, vector<2x17xf32>,
    %cst_9 = arith.constant 0.000000e+00 : f32
    %22 = vector.broadcast %cst_9 : f32 to vector<2x17xf32>
    %c0_10 = arith.constant 0 : index
    %c529 = arith.constant 529 : index
    %23 = vector.load %arg9[%c0_10, %c529] : memref<2x546xf32, #tpu.memory_space<vmem>>, vector<2x17xf32>
    tpu.vector_store %arg9[%c0_10, %c529], %22 {strides = array<i32>} : memref<2x546xf32, #tpu.memory_space<vmem>>, vector<2x17xf32>,
    %c0_11 = arith.constant 0 : index
    %c17 = arith.constant 17 : index
    %24 = vector.load %arg9[%c0_11, %c17] : memref<2x546xf32, #tpu.memory_space<vmem>>, vector<2x512xf32>
    tpu.vector_store %arg9[%c0_11, %c17], %19 {strides = array<i32>} : memref<2x546xf32, #tpu.memory_space<vmem>>, vector<2x512xf32>,
    %c0_12 = arith.constant 0 : index
    %c0_13 = arith.constant 0 : index
    %25 = vector.load %arg4[%c0_12, %c0_13] : memref<2x9xf32, #tpu.memory_space<vmem>>, vector<2x9xf32>
    %c0_14 = arith.constant 0 : index
    %c0_15 = arith.constant 0 : index
    %26 = vector.load %arg7[%c0_14, %c0_15] : memref<9x512xf32, #tpu.memory_space<vmem>>, vector<9x512xf32>
    %cst_16 = arith.constant 0.000000e+00 : f32
    %27 = vector.broadcast %cst_16 : f32 to vector<2x512xf32>
    %c0_17 = arith.constant 0 : index
    %c0_18 = arith.constant 0 : index
    %28 = vector.load %arg9[%c0_17, %c0_18] : memref<2x546xf32, #tpu.memory_space<vmem>>, vector<2x512xf32>
    %29 = vector.extract_strided_slice %26 {offsets = [0, 0], sizes = [1, 512], strides = [1, 1]} : vector<9x512xf32> to vector<1x512xf32>
    %30 = vector.broadcast %29 : vector<1x512xf32> to vector<2x512xf32>
    %31 = arith.mulf %28, %30 : vector<2x512xf32>
    %32 = vector.extract_strided_slice %25 {offsets = [0, 0], sizes = [2, 1], strides = [1, 1]} : vector<2x9xf32> to vector<2x1xf32>
    %33 = vector.broadcast %32 : vector<2x1xf32> to vector<2x512xf32>
    %34 = arith.mulf %31, %33 : vector<2x512xf32>
    %35 = arith.addf %27, %34 : vector<2x512xf32>
    %c0_19 = arith.constant 0 : index
    %c1 = arith.constant 1 : index
    %36 = vector.load %arg9[%c0_19, %c1] : memref<2x546xf32, #tpu.memory_space<vmem>>, vector<2x512xf32>
    %37 = vector.extract_strided_slice %26 {offsets = [1, 0], sizes = [1, 512], strides = [1, 1]} : vector<9x512xf32> to vector<1x512xf32>
    %38 = vector.broadcast %37 : vector<1x512xf32> to vector<2x512xf32>
    %39 = arith.mulf %36, %38 : vector<2x512xf32>
    %40 = vector.extract_strided_slice %25 {offsets = [0, 1], sizes = [2, 1], strides = [1, 1]} : vector<2x9xf32> to vector<2x1xf32>
    %41 = vector.broadcast %40 : vector<2x1xf32> to vector<2x512xf32>
    %42 = arith.mulf %39, %41 : vector<2x512xf32>
    %43 = arith.addf %35, %42 : vector<2x512xf32>
    %c0_20 = arith.constant 0 : index
    %c2 = arith.constant 2 : index
    %44 = vector.load %arg9[%c0_20, %c2] : memref<2x546xf32, #tpu.memory_space<vmem>>, vector<2x512xf32>
    %45 = vector.extract_strided_slice %26 {offsets = [2, 0], sizes = [1, 512], strides = [1, 1]} : vector<9x512xf32> to vector<1x512xf32>
    %46 = vector.broadcast %45 : vector<1x512xf32> to vector<2x512xf32>
    %47 = arith.mulf %44, %46 : vector<2x512xf32>
    %48 = vector.extract_strided_slice %25 {offsets = [0, 2], sizes = [2, 1], strides = [1, 1]} : vector<2x9xf32> to vector<2x1xf32>
    %49 = vector.broadcast %48 : vector<2x1xf32> to vector<2x512xf32>
    %50 = arith.mulf %47, %49 : vector<2x512xf32>
    %51 = arith.addf %43, %50 : vector<2x512xf32>
    %c0_21 = arith.constant 0 : index
    %c16 = arith.constant 16 : index
    %52 = vector.load %arg9[%c0_21, %c16] : memref<2x546xf32, #tpu.memory_space<vmem>>, vector<2x512xf32>
    %53 = vector.extract_strided_slice %26 {offsets = [3, 0], sizes = [1, 512], strides = [1, 1]} : vector<9x512xf32> to vector<1x512xf32>
    %54 = vector.broadcast %53 : vector<1x512xf32> to vector<2x512xf32>
    %55 = arith.mulf %52, %54 : vector<2x512xf32>
    %56 = vector.extract_strided_slice %25 {offsets = [0, 3], sizes = [2, 1], strides = [1, 1]} : vector<2x9xf32> to vector<2x1xf32>
    %57 = vector.broadcast %56 : vector<2x1xf32> to vector<2x512xf32>
    %58 = arith.mulf %55, %57 : vector<2x512xf32>
    %59 = arith.addf %51, %58 : vector<2x512xf32>
    %c0_22 = arith.constant 0 : index
    %c17_23 = arith.constant 17 : index
    %60 = vector.load %arg9[%c0_22, %c17_23] : memref<2x546xf32, #tpu.memory_space<vmem>>, vector<2x512xf32>
    %61 = vector.extract_strided_slice %25 {offsets = [0, 4], sizes = [2, 1], strides = [1, 1]} : vector<2x9xf32> to vector<2x1xf32>
    %62 = vector.broadcast %61 : vector<2x1xf32> to vector<2x512xf32>
    %63 = arith.mulf %60, %62 : vector<2x512xf32>
    %64 = arith.addf %59, %63 : vector<2x512xf32>
    %c0_24 = arith.constant 0 : index
    %c18 = arith.constant 18 : index
    %65 = vector.load %arg9[%c0_24, %c18] : memref<2x546xf32, #tpu.memory_space<vmem>>, vector<2x512xf32>
    %66 = vector.extract_strided_slice %26 {offsets = [5, 0], sizes = [1, 512], strides = [1, 1]} : vector<9x512xf32> to vector<1x512xf32>
    %67 = vector.broadcast %66 : vector<1x512xf32> to vector<2x512xf32>
    %68 = arith.mulf %65, %67 : vector<2x512xf32>
    %69 = vector.extract_strided_slice %25 {offsets = [0, 5], sizes = [2, 1], strides = [1, 1]} : vector<2x9xf32> to vector<2x1xf32>
    %70 = vector.broadcast %69 : vector<2x1xf32> to vector<2x512xf32>
    %71 = arith.mulf %68, %70 : vector<2x512xf32>
    %72 = arith.addf %64, %71 : vector<2x512xf32>
    %c0_25 = arith.constant 0 : index
    %c32 = arith.constant 32 : index
    %73 = vector.load %arg9[%c0_25, %c32] : memref<2x546xf32, #tpu.memory_space<vmem>>, vector<2x512xf32>
    %74 = vector.extract_strided_slice %26 {offsets = [6, 0], sizes = [1, 512], strides = [1, 1]} : vector<9x512xf32> to vector<1x512xf32>
    %75 = vector.broadcast %74 : vector<1x512xf32> to vector<2x512xf32>
    %76 = arith.mulf %73, %75 : vector<2x512xf32>
    %77 = vector.extract_strided_slice %25 {offsets = [0, 6], sizes = [2, 1], strides = [1, 1]} : vector<2x9xf32> to vector<2x1xf32>
    %78 = vector.broadcast %77 : vector<2x1xf32> to vector<2x512xf32>
    %79 = arith.mulf %76, %78 : vector<2x512xf32>
    %80 = arith.addf %72, %79 : vector<2x512xf32>
    %c0_26 = arith.constant 0 : index
    %c33 = arith.constant 33 : index
    %81 = vector.load %arg9[%c0_26, %c33] : memref<2x546xf32, #tpu.memory_space<vmem>>, vector<2x512xf32>
    %82 = vector.extract_strided_slice %26 {offsets = [7, 0], sizes = [1, 512], strides = [1, 1]} : vector<9x512xf32> to vector<1x512xf32>
    %83 = vector.broadcast %82 : vector<1x512xf32> to vector<2x512xf32>
    %84 = arith.mulf %81, %83 : vector<2x512xf32>
    %85 = vector.extract_strided_slice %25 {offsets = [0, 7], sizes = [2, 1], strides = [1, 1]} : vector<2x9xf32> to vector<2x1xf32>
    %86 = vector.broadcast %85 : vector<2x1xf32> to vector<2x512xf32>
    %87 = arith.mulf %84, %86 : vector<2x512xf32>
    %88 = arith.addf %80, %87 : vector<2x512xf32>
    %c0_27 = arith.constant 0 : index
    %c34 = arith.constant 34 : index
    %89 = vector.load %arg9[%c0_27, %c34] : memref<2x546xf32, #tpu.memory_space<vmem>>, vector<2x512xf32>
    %90 = vector.extract_strided_slice %26 {offsets = [8, 0], sizes = [1, 512], strides = [1, 1]} : vector<9x512xf32> to vector<1x512xf32>
    %91 = vector.broadcast %90 : vector<1x512xf32> to vector<2x512xf32>
    %92 = arith.mulf %89, %91 : vector<2x512xf32>
    %93 = vector.extract_strided_slice %25 {offsets = [0, 8], sizes = [2, 1], strides = [1, 1]} : vector<2x9xf32> to vector<2x1xf32>
    %94 = vector.broadcast %93 : vector<2x1xf32> to vector<2x512xf32>
    %95 = arith.mulf %92, %94 : vector<2x512xf32>
    %96 = arith.addf %88, %95 : vector<2x512xf32>
    %c0_28 = arith.constant 0 : index
    %c0_29 = arith.constant 0 : index
    %97 = vector.load %arg5[%c0_28, %c0_29] : memref<2x2xf32, #tpu.memory_space<vmem>>, vector<2x2xf32>
    %c0_30 = arith.constant 0 : index
    %c0_31 = arith.constant 0 : index
    %98 = vector.load %arg6[%c0_30, %c0_31] : memref<2x1xf32, #tpu.memory_space<vmem>>, vector<2x1xf32>
    %cst_32 = arith.constant 0.000000e+00 : f32
    %99 = vector.broadcast %cst_32 : f32 to vector<2x512xf32>
    %100 = vector.extract_strided_slice %97 {offsets = [0, 0], sizes = [2, 1], strides = [1, 1]} : vector<2x2xf32> to vector<2x1xf32>
    %101 = vector.extract_strided_slice %96 {offsets = [0, 0], sizes = [1, 512], strides = [1, 1]} : vector<2x512xf32> to vector<1x512xf32>
    %102 = vector.broadcast %100 : vector<2x1xf32> to vector<2x512xf32>
    %103 = vector.broadcast %101 : vector<1x512xf32> to vector<2x512xf32>
    %104 = arith.mulf %102, %103 : vector<2x512xf32>
    %105 = arith.addf %99, %104 : vector<2x512xf32>
    %106 = vector.extract_strided_slice %97 {offsets = [0, 1], sizes = [2, 1], strides = [1, 1]} : vector<2x2xf32> to vector<2x1xf32>
    %107 = vector.extract_strided_slice %96 {offsets = [1, 0], sizes = [1, 512], strides = [1, 1]} : vector<2x512xf32> to vector<1x512xf32>
    %108 = vector.broadcast %106 : vector<2x1xf32> to vector<2x512xf32>
    %109 = vector.broadcast %107 : vector<1x512xf32> to vector<2x512xf32>
    %110 = arith.mulf %108, %109 : vector<2x512xf32>
    %111 = arith.addf %105, %110 : vector<2x512xf32>
    %112 = vector.broadcast %98 : vector<2x1xf32> to vector<2x512xf32>
    %113 = arith.addf %111, %112 : vector<2x512xf32>
    %cst_33 = arith.constant 0.000000e+00 : f32
    %114 = vector.broadcast %cst_33 : f32 to vector<2x512xf32>
    %115 = arith.maximumf %113, %114 : vector<2x512xf32>
    %c0_34 = arith.constant 0 : index
    %c0_35 = arith.constant 0 : index
    %116 = vector.load %arg8[%c0_34, %c0_35] : memref<2x512xf32, #tpu.memory_space<vmem>>, vector<2x512xf32>
    tpu.vector_store %arg8[%c0_34, %c0_35], %115 {strides = array<i32>} : memref<2x512xf32, #tpu.memory_space<vmem>>, vector<2x512xf32>,
    return
  }
  func.func @transform_0(%arg0: i32) -> (i32, i32) {
    %c0_i32 = arith.constant 0 : i32
    %c0_i32_0 = arith.constant 0 : i32
    %c0_i32_1 = arith.constant 0 : i32
    return %c0_i32, %c0_i32_0 : i32, i32
  }
  func.func @transform_1(%arg0: i32) -> (i32, i32) {
    %c0_i32 = arith.constant 0 : i32
    %c0_i32_0 = arith.constant 0 : i32
    %c0_i32_1 = arith.constant 0 : i32
    return %c0_i32, %c0_i32_0 : i32, i32
  }
  func.func @transform_2(%arg0: i32) -> (i32, i32) {
    %c0_i32 = arith.constant 0 : i32
    %c0_i32_0 = arith.constant 0 : i32
    %c0_i32_1 = arith.constant 0 : i32
    return %c0_i32, %c0_i32_0 : i32, i32
  }
  func.func @transform_3(%arg0: i32) -> (i32, i32) {
    %c0_i32 = arith.constant 0 : i32
    %c0_i32_0 = arith.constant 0 : i32
    %c0_i32_1 = arith.constant 0 : i32
    return %c0_i32, %c0_i32_0 : i32, i32
  }
  func.func @transform_4(%arg0: i32) -> (i32, i32) {
    %c0_i32 = arith.constant 0 : i32
    %c0_i32_0 = arith.constant 0 : i32
    %c0_i32_1 = arith.constant 0 : i32
    return %c0_i32, %c0_i32_0 : i32, i32
  }
  func.func @transform_5(%arg0: i32) -> (i32, i32) {
    %c0_i32 = arith.constant 0 : i32
    %c0_i32_0 = arith.constant 0 : i32
    %c0_i32_1 = arith.constant 0 : i32
    return %c0_i32, %c0_i32_0 : i32, i32
  }
  func.func @transform_6(%arg0: i32) -> (i32, i32) {
    %c0_i32 = arith.constant 0 : i32
    %c0_i32_0 = arith.constant 0 : i32
    %c0_i32_1 = arith.constant 0 : i32
    return %c0_i32, %c0_i32_0 : i32, i32
  }
  func.func @transform_7(%arg0: i32) -> (i32, i32) {
    %c0_i32 = arith.constant 0 : i32
    %c0_i32_0 = arith.constant 0 : i32
    %c0_i32_1 = arith.constant 0 : i32
    return %c0_i32, %c0_i32_0 : i32, i32
  }
}

</mosaic_0001>

<bundles_post_ra>
// kernel: tpu_custom_call.1
= control target key start
LH: loop header
LB: loop body
LE: loop exit
PB: predicated region body
PF: predicated region fallthrough
CT: control target
= control target key end

     0   :  { %12 = vsyncpa [#allocation4], 0  ;;  %s1007_s0 = inlined_call_operand.hbm [shape: f32[2,512], index: 0, kind: input, shape index: {}]   ;;  %s1008_s1 = inlined_call_operand.vmem [shape: f32[2,2], index: 1, kind: input, shape index: {}]   ;;  %s1009_s2 = inlined_call_operand.vmem [shape: f32[2,1], index: 2, kind: input, shape index: {}]   ;;  %s1010_s3 = inlined_call_operand.vmem [shape: f32[2,9], index: 3, kind: input, shape index: {}]   ;;  %s1011_s4 = inlined_call_operand.vmem [shape: f32[2,2], index: 4, kind: input, shape index: {}]   ;;  %s1012_s5 = inlined_call_operand.vmem [shape: f32[2,1], index: 5, kind: input, shape index: {}]   ;;  %s1013_s6 = inlined_call_operand.hbm [shape: f32[9,512], index: 6, kind: input, shape index: {}]   ;;  %s1014_s7 = inlined_call_operand.hbm [shape: f32[2,512], index: 7, kind: output, shape index: {}]  }
   0x1   :  { %13 = vsyncpa [#allocation7], 0 }
   0x2   :  { %14 = vsyncpa [#allocation5], 0  ;;  %s20_s26 = sshll.u32 %s1007_s0, 4  ;;  %s763_s27 = smov [#allocation3]   ;;  %s21_s26 = int_to_ptr.hbm [resolvable:$true] %s20_s26 }
   0x3   :  { %s22_s28 = sshll.u32 %s763_s27, 4  ;;  %s40_s8 = sshll.u32 %s1013_s6, 4  ;;  %s23_s28 = int_to_ptr.vmem [resolvable:$true] %s22_s28  ;;  %s41_s8 = int_to_ptr.hbm [resolvable:$true] %s40_s8 }
   0x4   :  { %25 = dma.hbm_to_vmem [thread:$0]  %s21_s26, 128, %s23_s28, [#allocation4]  }
   0x5   :  { %s764_s9 = smov [#allocation6]   ;;  %s765_s11 = smov 512  }
   0x6   :  { %s42_s10 = sshll.u32 %s764_s9, 4  ;;  %s766_s12 = smov 32   ;;  %s43_s10 = int_to_ptr.vmem [resolvable:$true] %s42_s10 }
   0x7   :  { %48 = dma.hbm_to_vmem [thread:$0]  %s41_s8, 1024, %s43_s10, [#allocation7], %s765_s11, %s765_s11, %s766_s12  }
   0x8   :  { %757 = dma.done.wait [#allocation4], 128  }
   0x9   :  { %758 = vsyncadd [#allocation4], 4294967168 }
   0xa   :  { %759 = dma.done.wait [#allocation7], 1024  }
   0xb   :  { %760 = vsyncadd [#allocation7], 4294966272  ;;  %v767_v0 = vmov 0   ;;  %v58_v1 = vld [vmem:[%s1008_s1] sm:$0x3]  ;;  %v768_v4 = vmov 1  }
   0xc   :  { %666 = vset.pattern.permute.xlu0 %v767_v0  ;;  %668 = vset.pattern.permute.xlu1 %v767_v0  ;;  %v59_v2 = vld [vmem:[%s1009_s2] sm:$0x3]  ;;  %v861_v6 = vld [vmem:[#allocation6 + $0x10] sm:$0xff]  ;;  %v863_v7 = vld [vmem:[#allocation6 + $0x18] sm:$0xff]  ;;  %vm134_vm0 = vcmask 1041408   ;;  %vm136_vm1 = vcmask 1045508  }
   0xd   :  { %669 = vset.pattern.permute.xlu2 %v767_v0  ;;  %v853_v3 = vld [vmem:[%s1010_s3] sm:$0x3]  ;;  %62 = vperm.xlu0 %666, %v58_v1   ;;  %v243_v9 = vperm.slane %v861_v6, 2  ;;  %v867_v10 = vld [vmem:[#allocation6] sm:$0xff]  ;;  %v244_v12 = vperm.slane %v863_v7, 2  ;;  %vm138_vm2 = vcmask 1043456  }
   0xe   :  { %112 = vperm.xlu1 %668, %v59_v2   ;;  %183 = vperm.xlu2 %669, %v853_v3   ;;  %v859_v5 = vld [vmem:[#allocation6 + $0x8] sm:$0xff]  ;;  %v241_v11 = vperm.slane %v867_v10, 2  ;;  %s769_s1 = smov 2   ;;  %v770_v19 = vmov 3   ;;  %v196_v21 = vperm.slane %v861_v6, 1  ;;  %v197_v22 = vperm.slane %v863_v7, 1 }
   0xf   :  { %v242_v8 = vperm.slane %v859_v5, 2  ;;  %v250_v14 = vrot.slane %v243_v9, 4  ;;  %v251_v15 = vrot.slane %v244_v12, 2  ;;  %v195_v20 = vperm.slane %v859_v5, 1  ;;  %s772_s2 = smov 1   ;;  %v57_v39 = vld [vmem:[#allocation3] sm:$0xff] }
  0x10   :  { %v771_v23 = vmov 2   ;;  %v194_v24 = vperm.slane %v867_v10, 1  ;;  %v203_v26 = vrot.slane %v196_v21, 4  ;;  %v204_v27 = vrot.slane %v197_v22, 2  ;;  %s774_s3 = smov 16   ;;  %s776_s17 = smov 18  }
  0x11   :  { %v249_v13 = vrot.slane %v242_v8, 6  ;;  %v253_v17 = vsel %vm136_vm1, %v250_v14, %v251_v15  ;;  %v202_v25 = vrot.slane %v195_v20, 6  ;;  %v773_v31 = vmov 4   ;;  %s779_s18 = smov 17   ;;  %s781_s19 = smov 33  }
  0x12   :  { %v206_v29 = vsel %vm136_vm1, %v203_v26, %v204_v27  ;;  %v288_v32 = vperm.slane %v859_v5, 3  ;;  %v289_v33 = vperm.slane %v861_v6, 3  ;;  %v290_v34 = vperm.slane %v863_v7, 3  ;;  %s782_s20 = smov 34   ;;  %s785_s21 = smov 111  }
  0x13   :  { %v252_v16 = vsel %vm134_vm0, %v241_v11, %v249_v13  ;;  %v205_v28 = vsel %vm134_vm0, %v194_v24, %v202_v25  ;;  %v287_v35 = vperm.slane %v867_v10, 3  ;;  %v775_v43 = vmov 5   ;;  %s786_s22 = smov 126   ;;  %s787_s23 = smov 127  }
  0x14   :  { %v254_v18 = vsel %vm138_vm2, %v252_v16, %v253_v17  ;;  %v207_v30 = vsel %vm138_vm2, %v205_v28, %v206_v29  ;;  %v295_v36 = vrot.slane %v288_v32, 6  ;;  %v296_v37 = vrot.slane %v289_v33, 4  ;;  %s788_s24 = smov 112   ;;  %s789_s25 = smov 110  }
  0x15   :  { %667 = vset.pattern.permute.xlu0 %v768_v4  ;;  %v297_v38 = vrot.slane %v290_v34, 2  ;;  %v66_v45 = vperm.slane %v57_v39, 0  ;;  %v67_v46 = vperm.slane %v57_v39, 2  ;;  %v68_v47 = vperm.slane %v57_v39, 4  ;;  %s790_s26 = smov 96   ;;  %s791_s27 = smov 95  }
  0x16   :  { %670 = vset.pattern.permute.xlu1 %v768_v4  ;;  %87 = vperm.xlu0 %667, %v58_v1   ;;  %v298_v40 = vsel %vm134_vm0, %v287_v35, %v295_v36  ;;  %v69_v48 = vperm.slane %v57_v39, 6  ;;  %v90_v49 = vperm.slane %v57_v39, 1  ;;  %v91_v50 = vperm.slane %v57_v39, 3  ;;  %s792_s28 = smov 94  }
  0x17   :  { %218 = vperm.xlu1 %670, %v853_v3   ;;  %208 = vrot.lane.b32.xlu2 %v207_v30, %s772_s2  ;;  %v299_v41 = vsel %vm136_vm1, %v296_v37, %v297_v38  ;;  %v92_v51 = vperm.slane %v57_v39, 5  ;;  %v93_v52 = vperm.slane %v57_v39, 7  ;;  %v357_v53 = vperm.slane %v859_v5, 5 }
  0x18   :  { %v300_v42 = vsel %vm138_vm2, %v298_v40, %v299_v41  ;;  %v356_v54 = vperm.slane %v867_v10, 5  ;;  %v358_v55 = vperm.slane %v861_v6, 5  ;;  %v359_v56 = vperm.slane %v863_v7, 5 }
  0x19   :  { %v74_v57 = vperm.slane %v66_v45, 0  ;;  %v75_v58 = vperm.slane %v67_v46, 0  ;;  %v76_v59 = vperm.slane %v68_v47, 0  ;;  %v364_v60 = vrot.slane %v357_v53, 6 }
  0x1a   :  { %v77_v61 = vperm.slane %v69_v48, 0  ;;  %v98_v62 = vperm.slane %v90_v49, 1  ;;  %v365_v63 = vrot.slane %v358_v55, 4  ;;  %v366_v1 = vrot.slane %v359_v56, 2 }
  0x1b   :  { %v99_v2 = vperm.slane %v91_v50, 1  ;;  %v100_v8 = vperm.slane %v92_v51, 1  ;;  %v101_v9 = vperm.slane %v93_v52, 1  ;;  %v367_v11 = vsel %vm134_vm0, %v356_v54, %v364_v60 }
  0x1c   :  { %v368_v12 = vsel %vm136_vm1, %v365_v63, %v366_v1  ;;  %v404_v20 = vperm.slane %v861_v6, 6  ;;  %v405_v21 = vperm.slane %v863_v7, 6  ;;  %v402_v27 = vperm.slane %v867_v10, 6  ;;  %v682_v63 = vld [vmem:[#allocation6 + $0x28] ss:$0 sm:$0xff] }
  0x1d   :  { %v369_v16 = vsel %vm138_vm2, %v367_v11, %v368_v12  ;;  %v778_v45 = vmov 6   ;;  %v449_v54 = vperm.slane %v859_v5, 7  ;;  %v450_v55 = vperm.slane %v861_v6, 7  ;;  %v683_v1 = vld [vmem:[#allocation6 + $0x30] ss:$0 sm:$0xff] }
  0x1e   :  { %671 = vset.pattern.permute.xlu0 %v771_v23  ;;  %v411_v33 = vrot.slane %v404_v20, 4  ;;  %v412_v34 = vrot.slane %v405_v21, 2  ;;  %675 = vset.pattern.permute.xlu2 %v778_v45  ;;  %v451_v56 = vperm.slane %v863_v7, 7  ;;  %v681_v11 = vld [vmem:[#allocation6 + $0x20] ss:$0 sm:$0xff]  ;;  %v502_v12 = vrot.slane %v682_v63, 6 }
  0x1f   :  { %255 = vrot.lane.b32.xlu1 %v254_v18, %s769_s1  ;;  %265 = vperm.xlu0 %671, %v853_v3   ;;  %vm123_vm3 = vcmask 132096   ;;  %vm125_vm4 = vcmask 271496   ;;  %vm147_vm5 = vcmask 1041544   ;;  %vm148_vm6 = vcmask 1043458  }
  0x20   :  { %672 = vset.pattern.permute.xlu1 %v770_v19  ;;  %301 = vrot.lane.b32.xlu2 %v300_v42, %s774_s3  ;;  %v403_v19 = vperm.slane %v859_v5, 6  ;;  %v414_v40 = vsel %vm136_vm1, %v411_v33, %v412_v34  ;;  %v458_v60 = vrot.slane %v451_v56, 2  ;;  %vm149_vm7 = vmor %vm148_vm6, %vm147_vm5  ;;  %vm151_vm9 = vcmask 1047558  }
  0x21   :  { %vm150_vm8 = vmor %vm136_vm1, %vm149_vm7  ;;  %vm143_vm10 = vcmask 138240   ;;  %vm258_vm12 = vcmask 15360   ;;  %vm304_vm13 = vcmask 130048   ;;  %vm419_vm14 = vcmask 261120  }
  0x22   :  { %v410_v28 = vrot.slane %v403_v19, 6  ;;  %vm152_vm11 = vmor %vm151_vm9, %vm150_vm8  ;;  %vm465_vm15 = vcmask 269312   ;;  %vm511_vm5 = vcmask 277504   ;;  %vm235_vm6 = vcmask 1045504  }
  0x23   :  { %vm237_vm7 = vcmask 1039360   ;;  %vm283_vm8 = vcmask 1031168   ;;  %vm329_vm9 = vcmask 916480  }
  0x24   :  { %v413_v35 = vsel %vm134_vm0, %v402_v27, %v410_v28  ;;  %v168_v27 = vperm.slane %v863_v7, 0  ;;  %v784_v28 = vmov 269488144  }
  0x25   :  { %v415_v46 = vsel %vm138_vm2, %v413_v35, %v414_v40 }
  0x26   :  { %v175_v34 = vrot.slane %v168_v27, 2 }
  0x27   :  { %311 = vperm.xlu1 %672, %v853_v3   ;;  %674 = vset.pattern.permute.xlu0 %v775_v43 }
  0x28   :  { %380 = vperm.xlu0 %674, %v853_v3   ;;  %370 = vrot.lane.b32.xlu2 %v369_v16, %s776_s17 }
  0x2f   :  { %673 = vset.pattern.permute.xlu1 %v773_v31 }
  0x30   :  { %416 = vrot.lane.b32.xlu2 %v415_v46, %s766_s12  ;;  %s624_s12 = sshll.u32 %s1014_s7, 4  ;;  %s625_s12 = int_to_ptr.hbm [resolvable:$true] %s624_s12 }
  0x38   :  { %426 = vperm.xlu2 %675, %v853_v3  }
  0x7f   :  { %v63_v44 = vpop.permute.xlu0 %62 }
  0x80   :  { %v78_v13 = vmul.f32 %v74_v57, %v63_v44  ;;  %v79_v14 = vmul.f32 %v75_v58, %v63_v44  ;;  %v80_v15 = vmul.f32 %v76_v59, %v63_v44  ;;  %v81_v17 = vmul.f32 %v77_v61, %v63_v44  ;;  %v113_v26 = vpop.permute.xlu1 %112 }
  0x81   :  { %v777_v44 = vmov 8   ;;  %v448_v57 = vperm.slane %v867_v10, 7  ;;  %v456_v58 = vrot.slane %v449_v54, 6  ;;  %v457_v59 = vrot.slane %v450_v55, 4 }
  0x82   :  { %677 = vset.pattern.permute.xlu0 %v777_v44 }
  0x83   :  { %518 = vperm.xlu0 %677, %v853_v3   ;;  %v459_v61 = vsel %vm134_vm0, %v448_v57, %v456_v58 }
  0x88   :  { %v88_v18 = vpop.permute.xlu0 %87 }
  0x89   :  { %v102_v22 = vmul.f32 %v98_v62, %v88_v18  ;;  %v103_v23 = vmul.f32 %v99_v2, %v88_v18  ;;  %v104_v24 = vmul.f32 %v100_v8, %v88_v18  ;;  %v105_v25 = vmul.f32 %v101_v9, %v88_v18  ;;  %v684_v2 = vld [vmem:[#allocation6 + $0x38] ss:$0 sm:$0xff]  ;;  %v184_v18 = vpop.permute.xlu2 %183  ;;  %v219_v19 = vpop.permute.xlu1 %218 }
  0x8a   :  { %v460_v62 = vsel %vm136_vm1, %v457_v59, %v458_v60  ;;  %v780_v8 = vmov 7  }
  0x8b   :  { %v106_v29 = vadd.f32 %v102_v22, %v78_v13  ;;  %v107_v30 = vadd.f32 %v103_v23, %v79_v14  ;;  %v108_v31 = vadd.f32 %v104_v24, %v80_v15  ;;  %v109_v32 = vadd.f32 %v105_v25, %v81_v17  ;;  %680 = vset.pattern.permute.xlu0 %v767_v0 }
  0x8c   :  { %676 = vset.pattern.permute.xlu2 %v780_v8  ;;  %v461_v9 = vsel %vm138_vm2, %v459_v61, %v460_v62  ;;  %v503_v13 = vrot.slane %v683_v1, 4  ;;  %v504_v14 = vrot.slane %v684_v2, 2  ;;  %v505_v15 = vsel %vm134_vm0, %v681_v11, %v502_v12 }
  0x8d   :  { %v115_v36 = vadd.f32 %v113_v26, %v106_v29  ;;  %v116_v37 = vadd.f32 %v113_v26, %v107_v30  ;;  %v117_v38 = vadd.f32 %v113_v26, %v108_v31  ;;  %v118_v39 = vadd.f32 %v113_v26, %v109_v32  ;;  %472 = vperm.xlu2 %676, %v853_v3  }
  0x8e   :  { %v506_v16 = vsel %vm136_vm1, %v503_v13, %v504_v14  ;;  %v166_v25 = vperm.slane %v859_v5, 0  ;;  %v167_v26 = vperm.slane %v861_v6, 0  ;;  %v186_v29 = vunpack.c.l.s4 %v784_v28 }
  0x8f   :  { %v120_v41 = vmax.f32 %v116_v37, 0.0  ;;  %v121_v42 = vmax.f32 %v117_v38, 0.0  ;;  %v122_v43 = vmax.f32 %v118_v39, 0.0  ;;  %v119_v47 = vmax.f32 %v115_v36, 0.0 }
  0x90   :  { %v507_v17 = vsel %vm138_vm2, %v505_v15, %v506_v16  ;;  %v165_v31 = vperm.slane %v867_v10, 0  ;;  %v173_v32 = vrot.slane %v166_v25, 6  ;;  %v174_v33 = vrot.slane %v167_v26, 4 }
  0x91   :  { %v131_v48 = vrot.slane %v120_v41, 6  ;;  %v132_v49 = vrot.slane %v121_v42, 4  ;;  %v133_v50 = vrot.slane %v122_v43, 2  ;;  %v927_v20 = vpop.permute.xlu2 %208  ;;  %v939_v35 = vunpack.c.0.s8 %v186_v29  ;;  %v266_v37 = vpop.permute.xlu0 %265 }
  0x92   :  { %v176_v39 = vsel %vm134_vm0, %v165_v31, %v173_v32  ;;  %v177_v40 = vsel %vm136_vm1, %v174_v33, %v175_v34 }
  0x93   :  { %v135_v51 = vsel %vm134_vm0, %v119_v47, %v131_v48  ;;  %v137_v52 = vsel %vm136_vm1, %v132_v49, %v133_v50  ;;  %v270_v6 = vperm.slane %v266_v37, %v939_v35  ;;  %v178_v45 = vsel %vm138_vm2, %v176_v39, %v177_v40 }
  0x94   :  { %v139_v53 = vsel %vm138_vm2, %v135_v51, %v137_v52  ;;  %v210_v47 = vrot.slane %v927_v20, 6  ;;  %v188_v49 = vperm.slane %v184_v18, %v939_v35  ;;  %v223_v56 = vperm.slane %v219_v19, %v939_v35 }
  0x95   :  { %140 = vrot.lane.b32.xlu1 %v139_v53, %s779_s18  ;;  %679 = vset.pattern.permute.xlu2 %v768_v4 }
  0x99   :  { %v929_v21 = vpop.permute.xlu2 %301 }
  0x9a   :  { %v303_v50 = vrot.slane %v929_v21, 6  ;;  %v381_v63 = vpop.permute.xlu0 %380 }
  0x9b   :  { %v385_v12 = vperm.slane %v381_v63, %v939_v35 }
  0x9c   :  { %v305_v2 = vsel %vm304_vm13, %v303_v50, %v929_v21  ;;  %vm490_vm13 = vcmask 777216  }
  0x9d   :  { %334 = vperm.xlu1 %673, %v853_v3   ;;  %v783_v3 = vmov 0.0  }
  0x9e   :  { %124 = vst.msk [vmem:[#allocation2] sm:$0x3] %vm123_vm3, %v783_v3 }
  0x9f   :  { %126 = vst.msk [vmem:[#allocation2 + $0x8] sm:$0x3] %vm125_vm4, %v783_v3  ;;  %vm373_vm4 = vcmask 146432  }
  0xa1   :  { %v932_v4 = vpop.permute.xlu2 %370 }
  0xa2   :  { %v372_v60 = vrot.slane %v932_v4, 6 }
  0xa4   :  { %v374_v32 = vsel %vm373_vm4, %v372_v60, %v932_v4 }
  0xa5   :  { %462 = vrot.lane.b32.xlu1 %v461_v9, %s781_s19 }
  0xa6   :  { %678 = vset.pattern.permute.xlu1 %v767_v0  ;;  %v256_v0 = vpop.permute.xlu1 %255 }
  0xa7   :  { %v257_v36 = vrot.slane %v256_v0, 6 }
  0xa9   :  { %v417_v38 = vpop.permute.xlu2 %416  ;;  %v259_v48 = vsel %vm258_vm12, %v257_v36, %v256_v0  ;;  %vm444_vm12 = vcmask 785408  }
  0xaa   :  { %v418_v62 = vrot.slane %v417_v38, 6 }
  0xad   :  { %508 = vrot.lane.b32.xlu1 %v507_v17, %s782_s20  ;;  %v420_v17 = vsel %vm419_vm14, %v418_v62, %v417_v38  ;;  %vm536_vm14 = vcmask 769024  }
  0xae   :  { %v312_v22 = vpop.permute.xlu1 %311 }
  0xaf   :  { %v316_v57 = vperm.slane %v312_v22, %v939_v35 }
  0xb1   :  { %v427_v59 = vpop.permute.xlu2 %426 }
  0xb2   :  { %v431_v14 = vperm.slane %v427_v59, %v939_v35 }
  0xe7   :  { %v473_v0 = vpop.permute.xlu2 %472 }
 0x107   :  { %v141_v23 = vpop.permute.xlu1 %140 }
 0x108   :  { %v142_v24 = vrot.slane %v141_v23, 6 }
 0x10a   :  { %v144_v30 = vsel %vm143_vm10, %v142_v24, %v141_v23  ;;  %154 = vst.msk [vmem:[#allocation2 + $0x8] sm:$0x3] %vm123_vm3, %v142_v24  ;;  %vm211_vm3 = vcmask 7168   ;;  %v477_v24 = vperm.slane %v473_v0, %v939_v35  ;;  %vm352_vm10 = vcmask 908288  }
 0x10b   :  { %153 = vst.msk [vmem:[#allocation2] sm:$0xff] %vm152_vm11, %v144_v30  ;;  %v212_v22 = vsel %vm211_vm3, %v210_v47, %v927_v20  ;;  %v519_v30 = vpop.permute.xlu0 %518  ;;  %vm398_vm11 = vcmask 900096  }
 0x10c   :  { %v523_v34 = vperm.slane %v519_v30, %v939_v35 }
 0x10f   :  { %v335_v5 = vpop.permute.xlu1 %334 }
 0x110   :  { %v339_v7 = vperm.slane %v335_v5, %v939_v35  ;;  %v541_v35 = vld [vmem:[%s1012_s5] sm:$0x3] }
 0x111   :  { %v945_v41 = vld [vmem:[#allocation2 + $0x8] sm:$0x3] }
 0x112   :  { %v947_v10 = vld [vmem:[#allocation2] sm:$0xff]  ;;  %v263_v42 = vmul.f32 %v257_v36, %v945_v41  ;;  %v342_v43 = vmul.f32 %v339_v7, %v945_v41  ;;  %v216_v53 = vmul.f32 %v210_v47, %v945_v41  ;;  %v309_v54 = vmul.f32 %v303_v50, %v945_v41 }
 0x113   :  { %v341_v44 = vmul.f32 %v339_v7, %v947_v10  ;;  %v262_v51 = vmul.f32 %v259_v48, %v947_v10  ;;  %v180_v52 = vmul.f32 %v947_v10, %v178_v45  ;;  %v308_v9 = vmul.f32 %v305_v2, %v947_v10  ;;  %v540_v7 = vld [vmem:[%s1011_s4] sm:$0x3]  ;;  %s793_s4 = smov [#allocation8]  }
 0x114   :  { %v273_v46 = vmul.f32 %v270_v6, %v263_v42  ;;  %347 = vrot.lane.b32.xlu1 %v342_v43, %s785_s21  ;;  %v226_v61 = vmul.f32 %v223_v56, %v216_v53  ;;  %v319_v1 = vmul.f32 %v316_v57, %v309_v54  ;;  %v378_v11 = vmul.f32 %v372_v60, %v945_v41  ;;  %s622_s5 = sshll.u32 %s793_s4, 4  ;;  %s623_s5 = int_to_ptr.vmem [resolvable:$true] %s622_s5 }
 0x115   :  { %345 = vrot.lane.b32.xlu0 %v341_v44, %s785_s21  ;;  %v960_v55 = vmul.f32 %v188_v49, %v180_v52  ;;  %v272_v58 = vmul.f32 %v270_v6, %v262_v51  ;;  %v424_v13 = vmul.f32 %v418_v62, %v945_v41  ;;  %v318_v16 = vmul.f32 %v316_v57, %v308_v9 }
 0x116   :  { %278 = vrot.lane.b32.xlu2 %v273_v46, %s786_s22  ;;  %v388_v3 = vmul.f32 %v385_v12, %v378_v11  ;;  %v423_v21 = vmul.f32 %v420_v17, %v947_v10  ;;  %v215_v26 = vmul.f32 %v212_v22, %v947_v10  ;;  %v377_v36 = vmul.f32 %v374_v32, %v947_v10 }
 0x117   :  { %v463_v8 = vpop.permute.xlu1 %462  ;;  %v434_v18 = vmul.f32 %v431_v14, %v424_v13 }
 0x118   :  { %v464_v15 = vrot.slane %v463_v8, 6  ;;  %v433_v27 = vmul.f32 %v431_v14, %v423_v21  ;;  %v225_v31 = vmul.f32 %v223_v56, %v215_v26  ;;  %v387_v38 = vmul.f32 %v385_v12, %v377_v36 }
 0x11a   :  { %v466_v19 = vsel %vm465_vm15, %v464_v15, %v463_v8  ;;  %v470_v20 = vmul.f32 %v464_v15, %v945_v41 }
 0x11b   :  { %v469_v23 = vmul.f32 %v466_v19, %v947_v10 }
 0x11c   :  { %276 = vrot.lane.b32.xlu1 %v272_v58, %s786_s22  ;;  %v480_v37 = vmul.f32 %v477_v24, %v470_v20 }
 0x11d   :  { %231 = vrot.lane.b32.xlu0 %v226_v61, %s787_s23  ;;  %v479_v28 = vmul.f32 %v477_v24, %v469_v23 }
 0x11e   :  { %324 = vrot.lane.b32.xlu2 %v319_v1, %s788_s24 }
 0x11f   :  { %v509_v25 = vpop.permute.xlu1 %508 }
 0x120   :  { %v510_v29 = vrot.slane %v509_v25, 6 }
 0x122   :  { %v516_v33 = vmul.f32 %v510_v29, %v945_v41  ;;  %v512_v6 = vsel %vm511_vm5, %v510_v29, %v509_v25 }
 0x123   :  { %v515_v4 = vmul.f32 %v512_v6, %v947_v10 }
 0x124   :  { %322 = vrot.lane.b32.xlu1 %v318_v16, %s788_s24  ;;  %v526_v5 = vmul.f32 %v523_v34, %v516_v33 }
 0x125   :  { %393 = vrot.lane.b32.xlu0 %v388_v3, %s789_s25  ;;  %v525_v39 = vmul.f32 %v523_v34, %v515_v4 }
 0x126   :  { %439 = vrot.lane.b32.xlu2 %v434_v18, %s790_s26 }
 0x12c   :  { %437 = vrot.lane.b32.xlu1 %v433_v27, %s790_s26 }
 0x12d   :  { %483 = vrot.lane.b32.xlu0 %v479_v28, %s791_s27 }
 0x12e   :  { %229 = vrot.lane.b32.xlu2 %v225_v31, %s787_s23 }
 0x134   :  { %485 = vrot.lane.b32.xlu1 %v480_v37, %s791_s27 }
 0x135   :  { %531 = vrot.lane.b32.xlu0 %v526_v5, %s792_s28 }
 0x136   :  { %391 = vrot.lane.b32.xlu2 %v387_v38, %s789_s25 }
 0x13c   :  { %544 = vperm.xlu1 %678, %v540_v7  }
 0x13d   :  { %594 = vperm.xlu0 %680, %v541_v35  }
 0x13e   :  { %529 = vrot.lane.b32.xlu2 %v525_v39, %s792_s28 }
 0x146   :  { %569 = vperm.xlu2 %679, %v540_v7  }
 0x170   :  { %v279_v40 = vpop.permute.xlu2 %278 }
 0x171   :  { %v281_v53 = vrot.slane %v279_v40, 2 }
 0x178   :  { %v325_v41 = vpop.permute.xlu2 %324 }
 0x179   :  { %v327_v54 = vrot.slane %v325_v41, 2 }
 0x180   :  { %v440_v42 = vpop.permute.xlu2 %439 }
 0x181   :  { %v442_v16 = vrot.slane %v440_v42, 2 }
 0x186   :  { %v348_v43 = vpop.permute.xlu1 %347 }
 0x187   :  { %v346_v44 = vpop.permute.xlu0 %345  ;;  %v350_v61 = vrot.slane %v348_v43, 2 }
 0x188   :  { %v230_v45 = vpop.permute.xlu2 %229  ;;  %v349_v62 = vrot.slane %v346_v44, 2 }
 0x189   :  { %v233_v48 = vrot.slane %v230_v45, 2 }
 0x18a   :  { %v351_v11 = vsel %vm235_vm6, %v349_v62, %v350_v61 }
 0x18e   :  { %v277_v10 = vpop.permute.xlu1 %276 }
 0x18f   :  { %v232_v46 = vpop.permute.xlu0 %231  ;;  %v280_v50 = vrot.slane %v277_v10, 2 }
 0x190   :  { %v234_v47 = vrot.slane %v232_v46, 2  ;;  %v392_v63 = vpop.permute.xlu2 %391 }
 0x191   :  { %v282_v58 = vsel %vm235_vm6, %v280_v50, %v281_v53  ;;  %v395_v17 = vrot.slane %v392_v63, 2 }
 0x192   :  { %v236_v49 = vsel %vm235_vm6, %v233_v48, %v234_v47  ;;  %v284_v1 = vsel %vm283_vm8, %v277_v10, %v282_v58 }
 0x193   :  { %v238_v51 = vsel %vm237_vm7, %v230_v45, %v236_v49 }
 0x194   :  { %v240_v59 = vadd.f32 %v238_v51, %v960_v55  ;;  %v353_v55 = vsel %vm352_vm10, %v346_v44, %v351_v11 }
 0x196   :  { %v323_v52 = vpop.permute.xlu1 %322  ;;  %v286_v8 = vadd.f32 %v284_v1, %v240_v59 }
 0x197   :  { %v326_v56 = vrot.slane %v323_v52, 2  ;;  %v394_v57 = vpop.permute.xlu0 %393 }
 0x198   :  { %v396_v13 = vrot.slane %v394_v57, 2  ;;  %v530_v0 = vpop.permute.xlu2 %529 }
 0x199   :  { %v328_v60 = vsel %vm235_vm6, %v326_v56, %v327_v54  ;;  %v533_v28 = vrot.slane %v530_v0, 2 }
 0x19a   :  { %v330_v2 = vsel %vm329_vm9, %v323_v52, %v328_v60  ;;  %v397_v18 = vsel %vm235_vm6, %v395_v17, %v396_v13 }
 0x19b   :  { %v332_v12 = vadd.f32 %v330_v2, %v286_v8  ;;  %v399_v21 = vsel %vm398_vm11, %v392_v63, %v397_v18 }
 0x19d   :  { %v355_v3 = vadd.f32 %v353_v55, %v332_v12 }
 0x19e   :  { %v438_v9 = vpop.permute.xlu1 %437 }
 0x19f   :  { %v441_v14 = vrot.slane %v438_v9, 2  ;;  %v484_v15 = vpop.permute.xlu0 %483  ;;  %v401_v24 = vadd.f32 %v399_v21, %v355_v3 }
 0x1a0   :  { %v487_v25 = vrot.slane %v484_v15, 2  ;;  %v570_v4 = vpop.permute.xlu2 %569 }
 0x1a1   :  { %v443_v19 = vsel %vm235_vm6, %v441_v14, %v442_v16 }
 0x1a2   :  { %v445_v22 = vsel %vm444_vm12, %v438_v9, %v443_v19 }
 0x1a3   :  { %v447_v30 = vadd.f32 %v445_v22, %v401_v24 }
 0x1a6   :  { %v486_v23 = vpop.permute.xlu1 %485 }
 0x1a7   :  { %v488_v26 = vrot.slane %v486_v23, 2  ;;  %v532_v27 = vpop.permute.xlu0 %531 }
 0x1a8   :  { %v534_v29 = vrot.slane %v532_v27, 2 }
 0x1a9   :  { %v489_v31 = vsel %vm235_vm6, %v487_v25, %v488_v26 }
 0x1aa   :  { %v491_v32 = vsel %vm490_vm13, %v484_v15, %v489_v31  ;;  %v535_v20 = vsel %vm235_vm6, %v533_v28, %v534_v29 }
 0x1ab   :  { %v493_v33 = vadd.f32 %v491_v32, %v447_v30  ;;  %v537_v34 = vsel %vm536_vm14, %v530_v0, %v535_v20 }
 0x1ad   :  { %v539_v36 = vadd.f32 %v537_v34, %v493_v33 }
 0x1ae   :  { %v545_v45 = vpop.permute.xlu1 %544 }
 0x1af   :  { %v572_v37 = vperm.slane %v539_v36, 1  ;;  %v573_v5 = vperm.slane %v539_v36, 3  ;;  %v574_v38 = vperm.slane %v539_v36, 5  ;;  %v575_v6 = vperm.slane %v539_v36, 7  ;;  %v595_v58 = vpop.permute.xlu0 %594 }
 0x1b0   :  { %v548_v7 = vperm.slane %v539_v36, 0  ;;  %v549_v35 = vperm.slane %v539_v36, 2  ;;  %v550_v39 = vperm.slane %v539_v36, 4  ;;  %v551_v40 = vperm.slane %v539_v36, 6 }
 0x1b1   :  { %v580_v41 = vperm.slane %v572_v37, 1  ;;  %v581_v42 = vperm.slane %v573_v5, 1  ;;  %v582_v43 = vperm.slane %v574_v38, 1  ;;  %v583_v44 = vperm.slane %v575_v6, 1 }
 0x1b2   :  { %v556_v10 = vperm.slane %v548_v7, 0  ;;  %v557_v46 = vperm.slane %v549_v35, 0  ;;  %v558_v47 = vperm.slane %v550_v39, 0  ;;  %v559_v48 = vperm.slane %v551_v40, 0 }
 0x1b3   :  { %v584_v49 = vmul.f32 %v580_v41, %v570_v4  ;;  %v585_v50 = vmul.f32 %v581_v42, %v570_v4  ;;  %v586_v51 = vmul.f32 %v582_v43, %v570_v4  ;;  %v587_v52 = vmul.f32 %v583_v44, %v570_v4 }
 0x1b4   :  { %v560_v53 = vmul.f32 %v556_v10, %v545_v45  ;;  %v561_v54 = vmul.f32 %v557_v46, %v545_v45  ;;  %v562_v56 = vmul.f32 %v558_v47, %v545_v45  ;;  %v563_v57 = vmul.f32 %v559_v48, %v545_v45 }
 0x1b6   :  { %v588_v59 = vadd.f32 %v584_v49, %v560_v53  ;;  %v589_v60 = vadd.f32 %v585_v50, %v561_v54  ;;  %v590_v61 = vadd.f32 %v586_v51, %v562_v56  ;;  %v591_v62 = vadd.f32 %v587_v52, %v563_v57 }
 0x1b8   :  { %v597_v63 = vadd.f32 %v595_v58, %v588_v59  ;;  %v598_v1 = vadd.f32 %v595_v58, %v589_v60  ;;  %v599_v2 = vadd.f32 %v595_v58, %v590_v61  ;;  %v600_v8 = vadd.f32 %v595_v58, %v591_v62 }
 0x1ba   :  { %v602_v9 = vmax.f32 %v598_v1, 0.0  ;;  %v603_v11 = vmax.f32 %v599_v2, 0.0  ;;  %v604_v12 = vmax.f32 %v600_v8, 0.0  ;;  %v601_v13 = vmax.f32 %v597_v63, 0.0 }
 0x1bc   :  { %v609_v14 = vrot.slane %v602_v9, 6  ;;  %v610_v15 = vrot.slane %v603_v11, 4  ;;  %v611_v16 = vrot.slane %v604_v12, 2 }
 0x1be   :  { %v612_v17 = vsel %vm134_vm0, %v601_v13, %v609_v14  ;;  %v613_v55 = vsel %vm136_vm1, %v610_v15, %v611_v16 }
 0x1bf   :  { %v614_v3 = vsel %vm138_vm2, %v612_v17, %v613_v55 }
 0x1c0   :  { %616 = vst [vmem:[#allocation8] sm:$0xff] %v614_v3 }
 0x1c1   :  { %627 = dma.vmem_to_hbm [thread:$0]  %s623_s5, 128, %s625_s12, [#allocation5]  }
 0x1c2   :  { %761 = dma.done.wait [#allocation5], 128  }
 0x1c3   :  { %762 = vsyncadd [#allocation5], 4294967168 }
 0x1c4   :  { %632 = vsyncpa [#allocation4], 1 }
 0x1c5   :  { %633 = vsyncpa [#allocation7], 1 }
 0x1c6   :  { %634 = vsyncpa [#allocation5], 1 }

</bundles_post_ra>
